<compile_context>
chip_gen: v7x
topology: tpu7x:2x2x1
jax: 0.10.0
libtpu: 0.0.40
codegen_flags: <defaults>
</compile_context>

<pallas_src>
import functools

import jax
import jax.numpy as jnp
import numpy as np
from jax.experimental import pallas as pl
from jax.experimental.pallas import tpu as pltpu

EPS = 1e-9                 # normalizer epsilon (matches the PyTorch code)
AMIN = 1e-10               # torchaudio AmplitudeToDB amin
DB_MULT = 10.0             # stype="power"
LANE = 128
NORM_ROW_TILE = 512        # >=512 rows: HBM-roofline plateau for mem-bound passes
MEL_ROW_TILE = 256
VMEM_LIMIT = 32 * 1024 * 1024
_LN10_INV = float(1.0 / np.log(10.0))


def _round_up(x, m):
    return ((x + m - 1) // m) * m


def _cparams(semantics):
    return pltpu.CompilerParams(dimension_semantics=semantics,
                                vmem_limit_bytes=VMEM_LIMIT)


# -----------------------------------------------------------------------------
# Host-side constants: windowed real-DFT matrices and HTK mel filterbank
# (faithful to torchaudio defaults: periodic Hann, power=2, mel_scale="htk",
#  norm=None, f_min=0, f_max=sr/2).
# -----------------------------------------------------------------------------
def _hz_to_mel(f):
    return 2595.0 * np.log10(1.0 + np.asarray(f, np.float64) / 700.0)


def _mel_to_hz(m):
    return 700.0 * (10.0 ** (np.asarray(m, np.float64) / 2595.0) - 1.0)


def _mel_filterbank(sample_rate, n_fft, n_mels):
    n_stft = n_fft // 2 + 1
    all_freqs = np.linspace(0.0, sample_rate / 2.0, n_stft)
    m_pts = np.linspace(_hz_to_mel(0.0), _hz_to_mel(sample_rate / 2.0), n_mels + 2)
    f_pts = _mel_to_hz(m_pts)
    f_diff = f_pts[1:] - f_pts[:-1]
    slopes = f_pts[None, :] - all_freqs[:, None]          # (n_stft, n_mels + 2)
    down = -slopes[:, :-2] / f_diff[:-1]
    up = slopes[:, 2:] / f_diff[1:]
    return np.maximum(0.0, np.minimum(down, up)).astype(np.float32)


def _windowed_dft_mats(n_fft):
    n_stft = n_fft // 2 + 1
    n = np.arange(n_fft, dtype=np.float64)
    k = np.arange(n_stft, dtype=np.float64)
    win = 0.5 - 0.5 * np.cos(2.0 * np.pi * n / n_fft)     # periodic Hann
    ang = 2.0 * np.pi * np.outer(n, k) / n_fft
    cos_m = (win[:, None] * np.cos(ang)).astype(np.float32)
    sin_m = (-win[:, None] * np.sin(ang)).astype(np.float32)
    return cos_m, sin_m


# -----------------------------------------------------------------------------
# Kernels
# -----------------------------------------------------------------------------
def _mel_db_kernel(frames_ref, cos_ref, sin_ref, fb_ref, o_ref):
    """Windowed real-DFT -> power -> mel filterbank -> dB, for one T-tile."""
    fr = frames_ref[...]
    re = jnp.dot(fr, cos_ref[...], preferred_element_type=jnp.float32)
    im = jnp.dot(fr, sin_ref[...], preferred_element_type=jnp.float32)
    power = re * re + im * im
    mel = jnp.dot(power, fb_ref[...], preferred_element_type=jnp.float32)
    o_ref[...] = (DB_MULT * _LN10_INV) * jnp.log(jnp.maximum(mel, AMIN))


def _mvn_stats_kernel(x_ref, stats_ref, sum_ref, sq_ref, *, n_rows, n_cols,
                      per_column):
    """Pass 1: fused sum / sum-of-squares accumulation across T tiles.

    Padded rows/cols are exactly zero, so they contribute nothing to the sums;
    only the (static) valid element count is used when forming the mean.
    Finalize writes stats[0,:] = shift (mean), stats[1,:] = scale (1/(std+eps)).
    """
    pid = pl.program_id(0)

    @pl.when(pid == 0)
    def _init():
        sum_ref[...] = jnp.zeros(sum_ref.shape, jnp.float32)
        sq_ref[...] = jnp.zeros(sq_ref.shape, jnp.float32)

    x = x_ref[...]
    sum_ref[...] += jnp.sum(x, axis=0, keepdims=True)
    sq_ref[...] += jnp.sum(x * x, axis=0, keepdims=True)

    @pl.when(pid == pl.num_programs(0) - 1)
    def _finalize():
        fp = sum_ref.shape[1]
        ones = jnp.ones((1, fp), jnp.float32)
        if per_column:                       # per-time-frame stats (reduce over T)
            inv_n = 1.0 / float(n_rows)
            mean = sum_ref[...] * inv_n
            ex2 = sq_ref[...] * inv_n
        else:                                # global stats
            inv_n = 1.0 / float(n_rows * n_cols)
            mean = (jnp.sum(sum_ref[...]) * inv_n) * ones
            ex2 = (jnp.sum(sq_ref[...]) * inv_n) * ones
        var = jnp.maximum(ex2 - mean * mean, 0.0)   # E[x^2] - E[x]^2 (fused pass)
        inv_std = 1.0 / (jnp.sqrt(var) + EPS)       # single reciprocal, no per-elem div
        stats_ref[0:1, :] = mean
        stats_ref[1:2, :] = inv_std


def _minmax_stats_kernel(x_ref, stats_ref, mn_ref, mx_ref, *, n_rows, n_cols):
    """Pass 1 for global min-max: masked per-lane min/max accumulation."""
    pid = pl.program_id(0)
    tm = x_ref.shape[0]

    @pl.when(pid == 0)
    def _init():
        mn_ref[...] = jnp.full(mn_ref.shape, jnp.inf, jnp.float32)
        mx_ref[...] = jnp.full(mx_ref.shape, -jnp.inf, jnp.float32)

    x = x_ref[...]
    row = jax.lax.broadcasted_iota(jnp.int32, x.shape, 0) + pid * tm
    col = jax.lax.broadcasted_iota(jnp.int32, x.shape, 1)
    valid = (row < n_rows) & (col < n_cols)
    mn_ref[...] = jnp.minimum(
        mn_ref[...], jnp.min(jnp.where(valid, x, jnp.inf), axis=0, keepdims=True))
    mx_ref[...] = jnp.maximum(
        mx_ref[...], jnp.max(jnp.where(valid, x, -jnp.inf), axis=0, keepdims=True))

    @pl.when(pid == pl.num_programs(0) - 1)
    def _finalize():
        fp = mn_ref.shape[1]
        ones = jnp.ones((1, fp), jnp.float32)
        mn = jnp.min(mn_ref[...])
        mx = jnp.max(mx_ref[...])
        scale = 1.0 / (mx - mn)        # no eps: matches the reference semantics
        stats_ref[0:1, :] = mn * ones
        stats_ref[1:2, :] = scale * ones


def _apply_shift_scale_kernel(x_ref, stats_ref, o_ref):
    """Pass 2 (shared): out = (x - shift) * scale, per column."""
    o_ref[...] = (x_ref[...] - stats_ref[0:1, :]) * stats_ref[1:2, :]


def _strip_mvn_kernel(x_ref, o_ref, *, n_cols):
    """Per-row MVN: single pass, fused sum/sumsq, reciprocal multiplied in."""
    x = x_ref[...]
    inv_n = 1.0 / float(n_cols)                        # padded cols are zero
    mean = jnp.sum(x, axis=1, keepdims=True) * inv_n
    ex2 = jnp.sum(x * x, axis=1, keepdims=True) * inv_n
    var = jnp.maximum(ex2 - mean * mean, 0.0)
    inv_std = 1.0 / (jnp.sqrt(var) + EPS)
    o_ref[...] = (x - mean) * inv_std


def _strip_minmax_kernel(x_ref, o_ref, *, n_cols):
    """Per-row min-max: single pass, masked over valid columns."""
    x = x_ref[...]
    col = jax.lax.broadcasted_iota(jnp.int32, x.shape, 1)
    valid = col < n_cols
    mn = jnp.min(jnp.where(valid, x, jnp.inf), axis=1, keepdims=True)
    mx = jnp.max(jnp.where(valid, x, -jnp.inf), axis=1, keepdims=True)
    o_ref[...] = (x - mn) * (1.0 / (mx - mn))


# -----------------------------------------------------------------------------
# Pallas wrappers
# -----------------------------------------------------------------------------
def _mel_spectrogram_db(frames_padded, cos_pad, sin_pad, fb_pad,
                        row_tile=MEL_ROW_TILE):
    tp, nfft_pad = frames_padded.shape
    nstft_pad = cos_pad.shape[1]
    nmels_pad = fb_pad.shape[1]
    nb = tp // row_tile
    return pl.pallas_call(
        _mel_db_kernel,
        out_shape=jax.ShapeDtypeStruct((tp, nmels_pad), jnp.float32),
        grid=(nb,),
        in_specs=[
            pl.BlockSpec((row_tile, nfft_pad), lambda i: (i, 0)),
            pl.BlockSpec((nfft_pad, nstft_pad), lambda i: (0, 0)),
            pl.BlockSpec((nfft_pad, nstft_pad), lambda i: (0, 0)),
            pl.BlockSpec((nstft_pad, nmels_pad), lambda i: (0, 0)),
        ],
        out_specs=pl.BlockSpec((row_tile, nmels_pad), lambda i: (i, 0)),
        compiler_params=_cparams(("parallel",)),
    )(frames_padded, cos_pad, sin_pad, fb_pad)


def normalize(x, mode, row_tile=NORM_ROW_TILE):
    """Tiled Pallas normalization of a [T, F] mel spectrogram."""
    if mode in (None, "none"):
        return x        # identity: no kernel launch, no HBM round trip

    t, f = x.shape
    dtype = x.dtype
    tp = _round_up(t, row_tile)
    fp = _round_up(f, LANE)                 # lane-dense feature axis
    xp = jnp.pad(x.astype(jnp.float32), ((0, tp - t), (0, fp - f)))
    nb = tp // row_tile
    x_spec = pl.BlockSpec((row_tile, fp), lambda i: (i, 0))
    stats_spec = pl.BlockSpec((2, fp), lambda i: (0, 0))

    if mode in ("mvn", "time_mvn", "minmax"):
        if mode == "minmax":
            stats_kernel = functools.partial(_minmax_stats_kernel,
                                             n_rows=t, n_cols=f)
        else:
            stats_kernel = functools.partial(_mvn_stats_kernel, n_rows=t, n_cols=f,
                                             per_column=(mode == "time_mvn"))
        stats = pl.pallas_call(
            stats_kernel,
            out_shape=jax.ShapeDtypeStruct((2, fp), jnp.float32),
            grid=(nb,),
            in_specs=[x_spec],
            out_specs=stats_spec,
            scratch_shapes=[pltpu.VMEM((1, fp), jnp.float32),
                            pltpu.VMEM((1, fp), jnp.float32)],
            compiler_params=_cparams(("arbitrary",)),
        )(xp)
        out = pl.pallas_call(
            _apply_shift_scale_kernel,
            out_shape=jax.ShapeDtypeStruct((tp, fp), jnp.float32),
            grid=(nb,),
            in_specs=[x_spec, stats_spec],
            out_specs=x_spec,
            compiler_params=_cparams(("parallel",)),
        )(xp, stats)
    elif mode in ("strip_mvn", "strip_minmax"):
        kern = _strip_mvn_kernel if mode == "strip_mvn" else _strip_minmax_kernel
        out = pl.pallas_call(
            functools.partial(kern, n_cols=f),
            out_shape=jax.ShapeDtypeStruct((tp, fp), jnp.float32),
            grid=(nb,),
            in_specs=[x_spec],
            out_specs=x_spec,
            compiler_params=_cparams(("parallel",)),
        )(xp)
    else:
        raise ValueError(f"unknown normalization mode: {mode!r}")

    return out[:t, :f].astype(dtype)


class Normalizer:
    MODES = ("mvn", "strip_mvn", "time_mvn", "minmax", "strip_minmax", "none")

    def __init__(self, mode="mvn", row_tile=NORM_ROW_TILE):
        if mode not in self.MODES:
            raise ValueError(f"mode must be one of {self.MODES}")
        self.mode = mode
        self.row_tile = row_tile

    def __call__(self, mel_spec):
        assert mel_spec.ndim == 2, "Normalizer expects a [T, F] mel spectrogram"
        return normalize(mel_spec, self.mode, self.row_tile)


# -----------------------------------------------------------------------------
# The module
# -----------------------------------------------------------------------------
class MelSpecTransformNewNew:
    """JAX/Pallas port of the PyTorch MelSpecTransformNewNew forward pass."""

    def __init__(self, sample_rate, n_fft=400, n_mels=64,
                 normalizer=None, denormalizer=None):
        self.sample_rate = sample_rate
        self.n_fft = n_fft
        self.win_length = n_fft
        self.hop_length = n_fft // 2          # torchaudio default: win_length // 2
        self.n_mels = n_mels
        self.n_stft = n_fft // 2 + 1
        # None behaves like identity so forward() is always callable.
        self.normalizer = normalizer if normalizer is not None else (lambda m: m)
        self.denormalizer = denormalizer

        cos_m, sin_m = _windowed_dft_mats(n_fft)            # (n_fft, n_stft)
        fb = _mel_filterbank(sample_rate, n_fft, n_mels)    # (n_stft, n_mels)
        self._nfft_pad = _round_up(n_fft, LANE)
        self._nstft_pad = _round_up(self.n_stft, LANE)
        self._nmels_pad = _round_up(n_mels, LANE)
        self.cos_pad = jnp.asarray(np.pad(
            cos_m, ((0, self._nfft_pad - n_fft),
                    (0, self._nstft_pad - self.n_stft))))
        self.sin_pad = jnp.asarray(np.pad(
            sin_m, ((0, self._nfft_pad - n_fft),
                    (0, self._nstft_pad - self.n_stft))))
        self.fb_pad = jnp.asarray(np.pad(
            fb, ((0, self._nstft_pad - self.n_stft),
                 (0, self._nmels_pad - n_mels))))

    # --- STFT framing (wrapper-side layout plumbing, no compute) --------------
    def _frames(self, waveform):
        wav = jnp.asarray(waveform, jnp.float32).reshape(-1)     # squeeze()
        half = self.n_fft // 2
        padded = jnp.pad(wav, (half, half), mode="reflect")      # center=True
        n_frames = 1 + wav.shape[0] // self.hop_length
        idx = (jnp.arange(n_frames)[:, None] * self.hop_length
               + jnp.arange(self.n_fft)[None, :])
        frames = padded[idx]                                     # (T, n_fft)
        return jnp.pad(frames, ((0, 0), (0, self._nfft_pad - self.n_fft)))

    def _mel_db(self, waveform):
        frames = self._frames(waveform)
        t = frames.shape[0]
        tp = _round_up(t, MEL_ROW_TILE)
        frames = jnp.pad(frames, ((0, tp - t), (0, 0)))
        mel_db = _mel_spectrogram_db(frames, self.cos_pad, self.sin_pad, self.fb_pad)
        # squeeze() + permute(1, 0): rows are already time frames -> [T, n_mels]
        return mel_db[:t, :self.n_mels]

    def forward(self, waveform):
        return self.normalizer(self._mel_db(waveform))

    __call__ = forward

    def de_norm(self, this_mel_spec, waveform):
        if self.denormalizer is None:
            raise ValueError("de_norm requires a denormalizer")
        return self.denormalizer(this_mel_spec, self._mel_db(waveform))

    def inverse(self, mel_spec):
        # TODO(synk): InverseMelScale + GriffinLim are iterative optimisation
        # loops with no clean Pallas equivalent; not implemented.
        raise NotImplementedError("inverse() is not implemented in the Pallas port")


# -----------------------------------------------------------------------------
# Pure-JAX references (PyTorch semantics: std unbiased=False, eps=1e-9)
# -----------------------------------------------------------------------------
def _ref_mvn(x):
    m = x.mean()
    s = jnp.sqrt(((x - m) ** 2).mean())
    return (x - m) / (s + EPS)


def _ref_strip_mvn(x):
    m = x.mean(1, keepdims=True)
    s = jnp.sqrt(((x - m) ** 2).mean(1, keepdims=True))
    return (x - m) / (s + EPS)


def _ref_time_mvn(x):
    m = x.mean(0, keepdims=True)
    s = jnp.sqrt(((x - m) ** 2).mean(0, keepdims=True))
    return (x - m) / (s + EPS)


def _ref_minmax(x):
    return (x - x.min()) / (x.max() - x.min())


def _ref_strip_minmax(x):
    mn = x.min(1, keepdims=True)
    mx = x.max(1, keepdims=True)
    return (x - mn) / (mx - mn)


def _ref_forward(model, waveform, ref_normalizer):
    wav = jnp.asarray(waveform, jnp.float32).reshape(-1)
    half = model.n_fft // 2
    padded = jnp.pad(wav, (half, half), mode="reflect")
    n_frames = 1 + wav.shape[0] // model.hop_length
    idx = (jnp.arange(n_frames)[:, None] * model.hop_length
           + jnp.arange(model.n_fft)[None, :])
    frames = padded[idx]
    cos_m = model.cos_pad[:model.n_fft, :model.n_stft]
    sin_m = model.sin_pad[:model.n_fft, :model.n_stft]
    fb = model.fb_pad[:model.n_stft, :model.n_mels]
    hp = jax.lax.Precision.HIGHEST
    re = jnp.dot(frames, cos_m, precision=hp)
    im = jnp.dot(frames, sin_m, precision=hp)
    mel = jnp.dot(re * re + im * im, fb, precision=hp)
    mel_db = (DB_MULT * _LN10_INV) * jnp.log(jnp.maximum(mel, AMIN))
    return ref_normalizer(mel_db)


if __name__ == "__main__":
    key = jax.random.PRNGKey(0)
    k_wave, k_norm = jax.random.split(key)

    # --- 1) standalone normalizer kernels vs pure-JAX references --------------
    # T=1100 exercises multi-tile accumulation (3 x 512-row blocks), F=64 < 128
    # exercises the lane-padding / masking path.
    x = 2.0 * jax.random.normal(k_norm, (1100, 64), dtype=jnp.float32) + 1.0
    ref_funs = {
        "mvn": _ref_mvn,
        "strip_mvn": _ref_strip_mvn,
        "time_mvn": _ref_time_mvn,
        "minmax": _ref_minmax,
        "strip_minmax": _ref_strip_minmax,
        "none": lambda v: v,
    }
    for mode, ref_fun in ref_funs.items():
        out = jax.block_until_ready(Normalizer(mode)(x))
        ref = ref_fun(x)
        assert out.shape == x.shape and out.dtype == x.dtype
        np.testing.assert_allclose(np.asarray(out), np.asarray(ref),
                                   rtol=1e-3, atol=1e-3)

    # --- 2) full MelSpecTransformNewNew forward (mel -> dB -> MVN normalize) --
    sample_rate, n_fft, n_mels = 16000, 400, 64
    num_samples = 128000            # 8 s of audio -> 641 frames -> multi-tile grids
    waveform = 0.1 * jax.random.normal(k_wave, (num_samples,), dtype=jnp.float32)

    model = MelSpecTransformNewNew(sample_rate, n_fft=n_fft, n_mels=n_mels,
                                   normalizer=Normalizer("mvn"))
    out = jax.block_until_ready(model(waveform))
    ref = _ref_forward(model, waveform, _ref_mvn)
    n_frames = 1 + num_samples // (n_fft // 2)
    assert out.shape == (n_frames, n_mels)
    np.testing.assert_allclose(np.asarray(out), np.asarray(ref),
                               rtol=5e-3, atol=5e-2)

    print("KERNEL_OK")
</pallas_src>

<mosaic_0001>
module attributes {stable_mosaic.version = 11 : i64} {
  func.func @_mvn_stats_kernel(%arg0: i32, %arg1: memref<512x128xf32, #tpu.memory_space<vmem>>, %arg2: memref<2x128xf32, #tpu.memory_space<vmem>>, %arg3: memref<1x128xf32, #tpu.memory_space<vmem>>, %arg4: memref<1x128xf32, #tpu.memory_space<vmem>>) attributes {dimension_semantics = [#tpu.dimension_semantics<arbitrary>], iteration_bounds = array<i64: 3>, scalar_prefetch = 0 : i64, scratch_operands = 2 : i64, tpu.core_type = #tpu.core_type<tc>, window_params = [{transform_indices = @transform_0, window_bounds = array<i64: 512, 128>}, {pipeline_mode = #tpu.pipeline_mode<synchronous>, transform_indices = @transform_1, window_bounds = array<i64: 2, 128>}]} {
    %c0_i32 = arith.constant 0 : i32
    %0 = arith.cmpi eq, %arg0, %c0_i32 : i32
    %1 = arith.extui %0 : i1 to i32
    %c0_i32_0 = arith.constant 0 : i32
    %2 = arith.cmpi ne, %1, %c0_i32_0 : i32
    scf.if %2 {
      %cst_12 = arith.constant 0.000000e+00 : f32
      %18 = vector.broadcast %cst_12 : f32 to vector<1x128xf32>
      %c0_13 = arith.constant 0 : index
      %c0_14 = arith.constant 0 : index
      %19 = vector.load %arg3[%c0_13, %c0_14] : memref<1x128xf32, #tpu.memory_space<vmem>>, vector<1x128xf32>
      tpu.vector_store %arg3[%c0_13, %c0_14], %18 {strides = array<i32>} : memref<1x128xf32, #tpu.memory_space<vmem>>, vector<1x128xf32>,
      %cst_15 = arith.constant 0.000000e+00 : f32
      %20 = vector.broadcast %cst_15 : f32 to vector<1x128xf32>
      %c0_16 = arith.constant 0 : index
      %c0_17 = arith.constant 0 : index
      %21 = vector.load %arg4[%c0_16, %c0_17] : memref<1x128xf32, #tpu.memory_space<vmem>>, vector<1x128xf32>
      tpu.vector_store %arg4[%c0_16, %c0_17], %20 {strides = array<i32>} : memref<1x128xf32, #tpu.memory_space<vmem>>, vector<1x128xf32>,
    } else {
    }
    %c0 = arith.constant 0 : index
    %c0_1 = arith.constant 0 : index
    %3 = vector.load %arg1[%c0, %c0_1] : memref<512x128xf32, #tpu.memory_space<vmem>>, vector<512x128xf32>
    %c0_2 = arith.constant 0 : index
    %c0_3 = arith.constant 0 : index
    %4 = vector.load %arg3[%c0_2, %c0_3] : memref<1x128xf32, #tpu.memory_space<vmem>>, vector<1x128xf32>
    %cst = arith.constant dense<0.000000e+00> : vector<128xf32>
    %5 = vector.multi_reduction <add>, %3, %cst [0] : vector<512x128xf32> to vector<128xf32>
    %6 = vector.shape_cast %5 : vector<128xf32> to vector<1x128xf32>
    %7 = arith.addf %4, %6 : vector<1x128xf32>
    %c0_4 = arith.constant 0 : index
    %c0_5 = arith.constant 0 : index
    %8 = vector.load %arg3[%c0_4, %c0_5] : memref<1x128xf32, #tpu.memory_space<vmem>>, vector<1x128xf32>
    tpu.vector_store %arg3[%c0_4, %c0_5], %7 {strides = array<i32>} : memref<1x128xf32, #tpu.memory_space<vmem>>, vector<1x128xf32>,
    %c0_6 = arith.constant 0 : index
    %c0_7 = arith.constant 0 : index
    %9 = vector.load %arg4[%c0_6, %c0_7] : memref<1x128xf32, #tpu.memory_space<vmem>>, vector<1x128xf32>
    %10 = arith.mulf %3, %3 : vector<512x128xf32>
    %cst_8 = arith.constant dense<0.000000e+00> : vector<128xf32>
    %11 = vector.multi_reduction <add>, %10, %cst_8 [0] : vector<512x128xf32> to vector<128xf32>
    %12 = vector.shape_cast %11 : vector<128xf32> to vector<1x128xf32>
    %13 = arith.addf %9, %12 : vector<1x128xf32>
    %c0_9 = arith.constant 0 : index
    %c0_10 = arith.constant 0 : index
    %14 = vector.load %arg4[%c0_9, %c0_10] : memref<1x128xf32, #tpu.memory_space<vmem>>, vector<1x128xf32>
    tpu.vector_store %arg4[%c0_9, %c0_10], %13 {strides = array<i32>} : memref<1x128xf32, #tpu.memory_space<vmem>>, vector<1x128xf32>,
    %c2_i32 = arith.constant 2 : i32
    %15 = arith.cmpi eq, %arg0, %c2_i32 : i32
    %16 = arith.extui %15 : i1 to i32
    %c0_i32_11 = arith.constant 0 : i32
    %17 = arith.cmpi ne, %16, %c0_i32_11 : i32
    scf.if %17 {
      %cst_12 = arith.constant 1.000000e+00 : f32
      %18 = vector.broadcast %cst_12 : f32 to vector<1x128xf32>
      %c0_13 = arith.constant 0 : index
      %c0_14 = arith.constant 0 : index
      %19 = vector.load %arg3[%c0_13, %c0_14] : memref<1x128xf32, #tpu.memory_space<vmem>>, vector<1x128xf32>
      %20 = vector.shape_cast %19 : vector<1x128xf32> to vector<1x1x128xf32>
      %cst_15 = arith.constant dense<0.000000e+00> : vector<1xf32>
      %21 = vector.multi_reduction <add>, %20, %cst_15 [1, 2] : vector<1x1x128xf32> to vector<1xf32>
      %22 = vector.shape_cast %21 : vector<1xf32> to vector<1x1x1xf32>
      %23 = vector.extract %22[0, 0, 0] : f32 from vector<1x1x1xf32>
      %cst_16 = arith.constant 1.42045456E-5 : f32
      %24 = arith.mulf %23, %cst_16 : f32
      %25 = vector.broadcast %24 : f32 to vector<1x128xf32>
      %26 = arith.mulf %25, %18 : vector<1x128xf32>
      %c0_17 = arith.constant 0 : index
      %c0_18 = arith.constant 0 : index
      %27 = vector.load %arg4[%c0_17, %c0_18] : memref<1x128xf32, #tpu.memory_space<vmem>>, vector<1x128xf32>
      %28 = vector.shape_cast %27 : vector<1x128xf32> to vector<1x1x128xf32>
      %cst_19 = arith.constant dense<0.000000e+00> : vector<1xf32>
      %29 = vector.multi_reduction <add>, %28, %cst_19 [1, 2] : vector<1x1x128xf32> to vector<1xf32>
      %30 = vector.shape_cast %29 : vector<1xf32> to vector<1x1x1xf32>
      %31 = vector.extract %30[0, 0, 0] : f32 from vector<1x1x1xf32>
      %cst_20 = arith.constant 1.42045456E-5 : f32
      %32 = arith.mulf %31, %cst_20 : f32
      %33 = vector.broadcast %32 : f32 to vector<1x128xf32>
      %34 = arith.mulf %33, %18 : vector<1x128xf32>
      %35 = arith.mulf %26, %26 : vector<1x128xf32>
      %36 = arith.subf %34, %35 : vector<1x128xf32>
      %cst_21 = arith.constant 0.000000e+00 : f32
      %37 = vector.broadcast %cst_21 : f32 to vector<1x128xf32>
      %38 = arith.maximumf %36, %37 : vector<1x128xf32>
      %39 = math.sqrt %38 : vector<1x128xf32>
      %cst_22 = arith.constant 9.99999971E-10 : f32
      %40 = vector.broadcast %cst_22 : f32 to vector<1x128xf32>
      %41 = arith.addf %39, %40 : vector<1x128xf32>
      %cst_23 = arith.constant 1.000000e+00 : f32
      %42 = vector.broadcast %cst_23 : f32 to vector<1x128xf32>
      %43 = arith.divf %42, %41 : vector<1x128xf32>
      %c0_24 = arith.constant 0 : index
      %c0_25 = arith.constant 0 : index
      %44 = vector.load %arg2[%c0_24, %c0_25] : memref<2x128xf32, #tpu.memory_space<vmem>>, vector<1x128xf32>
      tpu.vector_store %arg2[%c0_24, %c0_25], %26 {strides = array<i32>} : memref<2x128xf32, #tpu.memory_space<vmem>>, vector<1x128xf32>,
      %c1 = arith.constant 1 : index
      %c0_26 = arith.constant 0 : index
      %45 = vector.load %arg2[%c1, %c0_26] : memref<2x128xf32, #tpu.memory_space<vmem>>, vector<1x128xf32>
      tpu.vector_store %arg2[%c1, %c0_26], %43 {strides = array<i32>} : memref<2x128xf32, #tpu.memory_space<vmem>>, vector<1x128xf32>,
    } else {
    }
    return
  }
  func.func @transform_0(%arg0: i32) -> (i32, i32) {
    %c0_i32 = arith.constant 0 : i32
    %c0_i32_0 = arith.constant 0 : i32
    return %arg0, %c0_i32 : i32, i32
  }
  func.func @transform_1(%arg0: i32) -> (i32, i32) {
    %c0_i32 = arith.constant 0 : i32
    %c0_i32_0 = arith.constant 0 : i32
    %c0_i32_1 = arith.constant 0 : i32
    return %c0_i32, %c0_i32_0 : i32, i32
  }
}

</mosaic_0001>

<bundles_post_ra>
// kernel: tpu_custom_call.1
= control target key start
LH: loop header
LB: loop body
LE: loop exit
PB: predicated region body
PF: predicated region fallthrough
CT: control target
= control target key end

     0   :  { %6 = vsyncpa [#allocation5], 0  ;;  %s882_s0 = inlined_call_operand.hbm [shape: f32[1536,128], index: 0, kind: input, shape index: {}]   ;;  %s883_s1 = inlined_call_operand.hbm [shape: f32[2,128], index: 1, kind: output, shape index: {}]  }
   0x1   :  { %8 = vsyncpa [#allocation5 + $0x1], 0 }
   0x2   :  { %9 = vsyncpa [#allocation6], 0  ;;  %s688_s6 = smov 0   ;;  %s690_s7 = smov 0  }
   0x3   :  { %s692_s8 = smov 0   ;;  %s694_s9 = smov 0  }
   0x4 LB: > { %s707_s10 = sadd.s32 4294967295, %s671_s9   ;;  %s710_s11 = sadd.s32 1, %s671_s9   ;;  %s671_s9 = sphi %s694_s9, %s890_s9   ;;  %s667_s8 = sphi %s692_s8, %s889_s8   ;;  %s663_s7 = sphi %s690_s7, %s888_s7   ;;  %s659_s6 = sphi %s688_s6, %s887_s6  }
   0x5   : > { %s19_s12 = ssub.s32 %s671_s9, %s710_s11  ;;  %s22_s13 = sadd.s32 1, %s667_s8 }
   0x6   : > { %p20_p0 = scmp.eq.s32.totalorder %s19_s12, 0  ;;  %p29_p1 = scmp.ne.s32.totalorder %s667_s8, %s663_s7 }
   0x7   : > { %p30_p2 = scmp.eq.s32.totalorder %s671_s9, 0  ;;  %p35_p3 = scmp.ne.s32.totalorder %s663_s7, %s659_s6 }
   0x8   : > { %s720_s14 = scalar_select %p20_p0, %s667_s8, %s22_s13  }
   0x9   : > { %p31_p4 = por %p30_p2, %p29_p1  ;;  %p36_p5 = scmp.eq.s32.totalorder %s707_s10, 0 }
   0xa   : > { %p534_p6 = scmp.lt.s32.totalorder %s671_s9, 3  ;;  %s80_s16 = sand.u32 1, %s667_s8  }
   0xb   : > { %p724_p7 = por %p36_p5, %p35_p3  ;;  %s508_s17 = sshll.u32 %s80_s16, 9 }
   0xc   : > { %s519_s18 = sshll.u32 %s671_s9, 13  ;;  %s84_s22 = scalar_lea.vmem [#allocation4], %s508_s17 }
   0xd   : > { %s733_s21 = scalar_lea.hbm %s882_s0, %s519_s18  ;;  %s91_s23 = sshll.u32 %s84_s22, 4  ;;  %s735_s23 = int_to_ptr.vmem [resolvable:$true] %s91_s23 }
   0xe   : > { %p737_p8 = pnand %p534_p6, %p31_p4  ;;  %s742_s25 = scalar_lea.sflag [#allocation5], %s80_s16 }
   0xf   : > { %s577_s26 = scalar_lea.hbm %s733_s21, 8192  ;;  %s582_s29 = scalar_lea.hbm %s882_s0, 24576 }
  0x10   : > { %p578_p10 = scmp.ne.s32.totalorder %s733_s21, %s577_s26  ;;  %p579_p11 = pneg %p737_p8 }
  0x11   : > { %p583_p0 = scmp.lt.u32.totalorder %s733_s21, %s882_s0  ;;  %p584_p1 = scmp.lt.u32.totalorder %s582_s29, %s577_s26 }
  0x12   : > { %p580_p12 = pnand %p579_p11, %p578_p10  ;;  %p586_p3 = scmp.lt.u32.totalorder %s577_s26, %s733_s21 }
  0x13   : > { %p585_p2 = por %p584_p1, %p583_p0 }
  0x14   : > { %p581_p13 = pneg %p580_p12 }
  0x15   : > { %p587_p4 = por %p586_p3, %p585_p2 }
  0x17   : > { %p588_p5 = pnand %p587_p4, %p581_p13 }
  0x19   : > { %591 = shalt.err (!%p588_p5)
}
  0x1a   : > { %s592_s3 = scalar_lea.vmem %s735_s23, 8192  ;;  %s673_s4 = smov [#allocation4]  }
  0x1b   : > { %p593_p6 = scmp.ne.s32.totalorder %s735_s23, %s592_s3  ;;  %s597_s5 = sshll.u32 %s673_s4, 4  ;;  %s598_s5 = int_to_ptr.vmem [resolvable:$false] %s597_s5 }
  0x1c   : > { %s599_s6 = scalar_lea.vmem %s598_s5, 16384  ;;  %p600_p9 = scmp.lt.s32.totalorder %s735_s23, %s598_s5 }
  0x1d   : > { %p595_p10 = pnand %p593_p6, %p579_p11  ;;  %p601_p0 = scmp.lt.s32.totalorder %s599_s6, %s592_s3 }
  0x1f   : > { %p596_p12 = pneg %p595_p10  ;;  %p602_p1 = por %p601_p0, %p600_p9 }
  0x21   : > { %p603_p2 = pnand %p602_p1, %p596_p12 }
  0x23   : > { %606 = shalt.err (!%p603_p2)
}
  0x24   : > { %s674_s12 = smov 128   ;;  %s675_s13 = smov 8  }
  0x25   : > { %533 = dma.hbm_to_vmem [thread:$0]  (!%p737_p8), %s733_s21, 8192, %s735_s23, %s742_s25, %s674_s12, %s674_s12, %s675_s13  }
  0x26   : > { %p99_p11 = scmp.lt.s32.totalorder %s671_s9, 4  ;;  %p886_p13 = scmp.ge.s32.totalorder %s671_s9, 1 }
  0x28   : > { %p100_p3 = pnand %p886_p13, %p99_p11 }
  0x29   : > { %s105_s16 = sand.u32 (!%p100_p3), 1, %s663_s7  }
  0x2a   : > { %103 = sbr.rel (%p100_p3) target bundleno = 478 (0x1de), region = 24  ;;  %s512_s17 = sshll.u32 (!%p100_p3), %s105_s16, 9 }
  0x2b   : > { %s106_s18 = scalar_lea.sflag (!%p100_p3), [#allocation5], %s105_s16  ;;  %s774_s19 = scalar_lea.vmem (!%p100_p3), [#allocation4], %s512_s17 }
  0x31   : > { %650 = dma.done.wait (%p724_p7), %s106_s18, 8192  }
  0x32   : > { %652 = vsyncadd (%p724_p7), %s106_s18, 4294959104  ;;  %p513_p9 = scmp.ne.s32.totalorder %s707_s10, 0 }
  0x33   : > { %v676_v0 = vmov (!%p513_p9), 0.0  }
  0x34   : > { %127 = sbr.rel (%p513_p9) target bundleno = 59 (0x3b), region = 32  ;;  %128 = vst [vmem:[#allocation2] sm:$0x1] (!%p513_p9), %v676_v0  ;;  %129 = vst [vmem:[#allocation3] sm:$0x1] (!%p513_p9), %v676_v0 }
  0x3b PF: > { %v130_v1 = vld [vmem:[%s774_s19] sm:$0xff]  ;;  %v131_v2 = vld [vmem:[%s774_s19 + $0x8] sm:$0xff]  ;;  %v132_v3 = vld [vmem:[%s774_s19 + $0x10] sm:$0xff]  ;;  %p514_p7 = scmp.ne.s32.totalorder %s707_s10, 2 }
  0x3c   : > { %v133_v4 = vld [vmem:[%s774_s19 + $0x18] sm:$0xff]  ;;  %v195_v5 = vadd.f32 %v131_v2, %v130_v1  ;;  %v267_v6 = vmul.f32 %v130_v1, %v130_v1  ;;  %v268_v7 = vmul.f32 %v131_v2, %v131_v2  ;;  %v269_v8 = vmul.f32 %v132_v3, %v132_v3  ;;  %v134_v9 = vld [vmem:[%s774_s19 + $0x20] sm:$0xff]  ;;  %v135_v13 = vld [vmem:[%s774_s19 + $0x28] sm:$0xff] }
  0x3d   : > { %v270_v11 = vmul.f32 %v133_v4, %v133_v4  ;;  %v271_v15 = vmul.f32 %v134_v9, %v134_v9  ;;  %v136_v17 = vld [vmem:[%s774_s19 + $0x30] sm:$0xff]  ;;  %v272_v19 = vmul.f32 %v135_v13, %v135_v13  ;;  %v137_v21 = vld [vmem:[%s774_s19 + $0x38] sm:$0xff]  ;;  %v138_v25 = vld [vmem:[%s774_s19 + $0x40] sm:$0xff]  ;;  %vm407_vm0 = vcmask (!%p514_p7), 1040384  }
  0x3e   : > { %v196_v10 = vadd.f32 %v195_v5, %v132_v3  ;;  %v331_v12 = vadd.f32 %v268_v7, %v267_v6  ;;  %v273_v23 = vmul.f32 %v136_v17, %v136_v17  ;;  %v274_v27 = vmul.f32 %v137_v21, %v137_v21  ;;  %v139_v29 = vld [vmem:[%s774_s19 + $0x48] sm:$0xff]  ;;  %v140_v33 = vld [vmem:[%s774_s19 + $0x50] sm:$0xff]  ;;  %v141_v37 = vld [vmem:[%s774_s19 + $0x58] sm:$0xff] }
  0x3f   : > { %v275_v31 = vmul.f32 %v138_v25, %v138_v25  ;;  %v276_v35 = vmul.f32 %v139_v29, %v139_v29  ;;  %v277_v39 = vmul.f32 %v140_v33, %v140_v33  ;;  %v142_v41 = vld [vmem:[%s774_s19 + $0x60] sm:$0xff]  ;;  %v278_v43 = vmul.f32 %v141_v37, %v141_v37  ;;  %v143_v45 = vld [vmem:[%s774_s19 + $0x68] sm:$0xff]  ;;  %v144_v49 = vld [vmem:[%s774_s19 + $0x70] sm:$0xff] }
  0x40   : > { %v197_v14 = vadd.f32 %v196_v10, %v133_v4  ;;  %v332_v16 = vadd.f32 %v331_v12, %v269_v8  ;;  %v279_v47 = vmul.f32 %v142_v41, %v142_v41  ;;  %v280_v51 = vmul.f32 %v143_v45, %v143_v45  ;;  %v145_v53 = vld [vmem:[%s774_s19 + $0x78] sm:$0xff]  ;;  %v146_v57 = vld [vmem:[%s774_s19 + $0x80] sm:$0xff]  ;;  %v147_v61 = vld [vmem:[%s774_s19 + $0x88] sm:$0xff] }
  0x41   : > { %v281_v55 = vmul.f32 %v144_v49, %v144_v49  ;;  %v282_v59 = vmul.f32 %v145_v53, %v145_v53  ;;  %v283_v63 = vmul.f32 %v146_v57, %v146_v57  ;;  %v148_v1 = vld [vmem:[%s774_s19 + $0x90] sm:$0xff]  ;;  %v284_v3 = vmul.f32 %v147_v61, %v147_v61  ;;  %v149_v5 = vld [vmem:[%s774_s19 + $0x98] sm:$0xff] }
  0x42   : > { %v198_v18 = vadd.f32 %v197_v14, %v134_v9  ;;  %v333_v20 = vadd.f32 %v332_v16, %v270_v11  ;;  %v285_v7 = vmul.f32 %v148_v1, %v148_v1  ;;  %v150_v9 = vld [vmem:[%s774_s19 + $0xa0] sm:$0xff]  ;;  %v286_v11 = vmul.f32 %v149_v5, %v149_v5 }
  0x44   : > { %v199_v22 = vadd.f32 %v198_v18, %v135_v13  ;;  %v334_v24 = vadd.f32 %v333_v20, %v271_v15  ;;  %v151_v13 = vld [vmem:[%s774_s19 + $0xa8] sm:$0xff]  ;;  %v287_v15 = vmul.f32 %v150_v9, %v150_v9 }
  0x46   : > { %v200_v26 = vadd.f32 %v199_v22, %v136_v17  ;;  %v335_v28 = vadd.f32 %v334_v24, %v272_v19  ;;  %v152_v17 = vld [vmem:[%s774_s19 + $0xb0] sm:$0xff]  ;;  %v288_v19 = vmul.f32 %v151_v13, %v151_v13 }
  0x48   : > { %v201_v30 = vadd.f32 %v200_v26, %v137_v21  ;;  %v336_v32 = vadd.f32 %v335_v28, %v273_v23  ;;  %v153_v21 = vld [vmem:[%s774_s19 + $0xb8] sm:$0xff]  ;;  %v289_v23 = vmul.f32 %v152_v17, %v152_v17 }
  0x4a   : > { %v202_v34 = vadd.f32 %v201_v30, %v138_v25  ;;  %v337_v36 = vadd.f32 %v336_v32, %v274_v27  ;;  %v154_v25 = vld [vmem:[%s774_s19 + $0xc0] sm:$0xff]  ;;  %v290_v27 = vmul.f32 %v153_v21, %v153_v21 }
  0x4c   : > { %v203_v38 = vadd.f32 %v202_v34, %v139_v29  ;;  %v338_v40 = vadd.f32 %v337_v36, %v275_v31  ;;  %v155_v29 = vld [vmem:[%s774_s19 + $0xc8] sm:$0xff]  ;;  %v291_v31 = vmul.f32 %v154_v25, %v154_v25 }
  0x4e   : > { %v204_v42 = vadd.f32 %v203_v38, %v140_v33  ;;  %v339_v44 = vadd.f32 %v338_v40, %v276_v35  ;;  %v156_v33 = vld [vmem:[%s774_s19 + $0xd0] sm:$0xff]  ;;  %v292_v35 = vmul.f32 %v155_v29, %v155_v29 }
  0x50   : > { %v205_v46 = vadd.f32 %v204_v42, %v141_v37  ;;  %v340_v48 = vadd.f32 %v339_v44, %v277_v39  ;;  %v157_v37 = vld [vmem:[%s774_s19 + $0xd8] sm:$0xff]  ;;  %v293_v39 = vmul.f32 %v156_v33, %v156_v33 }
  0x52   : > { %v206_v50 = vadd.f32 %v205_v46, %v142_v41  ;;  %v341_v52 = vadd.f32 %v340_v48, %v278_v43  ;;  %v158_v41 = vld [vmem:[%s774_s19 + $0xe0] sm:$0xff]  ;;  %v294_v43 = vmul.f32 %v157_v37, %v157_v37 }
  0x54   : > { %v207_v54 = vadd.f32 %v206_v50, %v143_v45  ;;  %v342_v56 = vadd.f32 %v341_v52, %v279_v47  ;;  %v159_v45 = vld [vmem:[%s774_s19 + $0xe8] sm:$0xff]  ;;  %v295_v47 = vmul.f32 %v158_v41, %v158_v41 }
  0x56   : > { %v208_v58 = vadd.f32 %v207_v54, %v144_v49  ;;  %v343_v60 = vadd.f32 %v342_v56, %v280_v51  ;;  %v160_v49 = vld [vmem:[%s774_s19 + $0xf0] sm:$0xff]  ;;  %v296_v51 = vmul.f32 %v159_v45, %v159_v45 }
  0x58   : > { %v209_v62 = vadd.f32 %v208_v58, %v145_v53  ;;  %v344_v0 = vadd.f32 %v343_v60, %v281_v55  ;;  %v161_v53 = vld [vmem:[%s774_s19 + $0xf8] sm:$0xff]  ;;  %v297_v55 = vmul.f32 %v160_v49, %v160_v49 }
  0x5a   : > { %v210_v2 = vadd.f32 %v209_v62, %v146_v57  ;;  %v345_v4 = vadd.f32 %v344_v0, %v282_v59  ;;  %v162_v57 = vld [vmem:[%s774_s19 + $0x100] sm:$0xff]  ;;  %v298_v59 = vmul.f32 %v161_v53, %v161_v53 }
  0x5c   : > { %v211_v6 = vadd.f32 %v210_v2, %v147_v61  ;;  %v346_v8 = vadd.f32 %v345_v4, %v283_v63  ;;  %v163_v61 = vld [vmem:[%s774_s19 + $0x108] sm:$0xff]  ;;  %v299_v63 = vmul.f32 %v162_v57, %v162_v57 }
  0x5e   : > { %v212_v10 = vadd.f32 %v211_v6, %v148_v1  ;;  %v347_v12 = vadd.f32 %v346_v8, %v284_v3  ;;  %v164_v1 = vld [vmem:[%s774_s19 + $0x110] sm:$0xff]  ;;  %v300_v3 = vmul.f32 %v163_v61, %v163_v61 }
  0x60   : > { %v213_v14 = vadd.f32 %v212_v10, %v149_v5  ;;  %v348_v16 = vadd.f32 %v347_v12, %v285_v7  ;;  %v165_v5 = vld [vmem:[%s774_s19 + $0x118] sm:$0xff]  ;;  %v301_v7 = vmul.f32 %v164_v1, %v164_v1 }
  0x62   : > { %v214_v18 = vadd.f32 %v213_v14, %v150_v9  ;;  %v349_v20 = vadd.f32 %v348_v16, %v286_v11  ;;  %v166_v9 = vld [vmem:[%s774_s19 + $0x120] sm:$0xff]  ;;  %v302_v11 = vmul.f32 %v165_v5, %v165_v5 }
  0x64   : > { %v215_v22 = vadd.f32 %v214_v18, %v151_v13  ;;  %v350_v24 = vadd.f32 %v349_v20, %v287_v15  ;;  %v167_v13 = vld [vmem:[%s774_s19 + $0x128] sm:$0xff]  ;;  %v303_v15 = vmul.f32 %v166_v9, %v166_v9 }
  0x66   : > { %v216_v26 = vadd.f32 %v215_v22, %v152_v17  ;;  %v351_v28 = vadd.f32 %v350_v24, %v288_v19  ;;  %v168_v17 = vld [vmem:[%s774_s19 + $0x130] sm:$0xff]  ;;  %v304_v19 = vmul.f32 %v167_v13, %v167_v13 }
  0x68   : > { %v217_v30 = vadd.f32 %v216_v26, %v153_v21  ;;  %v352_v32 = vadd.f32 %v351_v28, %v289_v23  ;;  %v169_v21 = vld [vmem:[%s774_s19 + $0x138] sm:$0xff]  ;;  %v305_v23 = vmul.f32 %v168_v17, %v168_v17 }
  0x6a   : > { %v218_v34 = vadd.f32 %v217_v30, %v154_v25  ;;  %v353_v36 = vadd.f32 %v352_v32, %v290_v27  ;;  %v170_v25 = vld [vmem:[%s774_s19 + $0x140] sm:$0xff]  ;;  %v306_v27 = vmul.f32 %v169_v21, %v169_v21 }
  0x6c   : > { %v219_v38 = vadd.f32 %v218_v34, %v155_v29  ;;  %v354_v40 = vadd.f32 %v353_v36, %v291_v31  ;;  %v171_v29 = vld [vmem:[%s774_s19 + $0x148] sm:$0xff]  ;;  %v307_v31 = vmul.f32 %v170_v25, %v170_v25 }
  0x6e   : > { %v220_v42 = vadd.f32 %v219_v38, %v156_v33  ;;  %v355_v44 = vadd.f32 %v354_v40, %v292_v35  ;;  %v172_v33 = vld [vmem:[%s774_s19 + $0x150] sm:$0xff]  ;;  %v308_v35 = vmul.f32 %v171_v29, %v171_v29 }
  0x70   : > { %v221_v46 = vadd.f32 %v220_v42, %v157_v37  ;;  %v356_v48 = vadd.f32 %v355_v44, %v293_v39  ;;  %v173_v37 = vld [vmem:[%s774_s19 + $0x158] sm:$0xff]  ;;  %v309_v39 = vmul.f32 %v172_v33, %v172_v33 }
  0x72   : > { %v222_v50 = vadd.f32 %v221_v46, %v158_v41  ;;  %v357_v52 = vadd.f32 %v356_v48, %v294_v43  ;;  %v174_v41 = vld [vmem:[%s774_s19 + $0x160] sm:$0xff]  ;;  %v310_v43 = vmul.f32 %v173_v37, %v173_v37 }
  0x74   : > { %v223_v54 = vadd.f32 %v222_v50, %v159_v45  ;;  %v358_v56 = vadd.f32 %v357_v52, %v295_v47  ;;  %v175_v45 = vld [vmem:[%s774_s19 + $0x168] sm:$0xff]  ;;  %v311_v47 = vmul.f32 %v174_v41, %v174_v41 }
  0x76   : > { %v224_v58 = vadd.f32 %v223_v54, %v160_v49  ;;  %v359_v60 = vadd.f32 %v358_v56, %v296_v51  ;;  %v176_v49 = vld [vmem:[%s774_s19 + $0x170] sm:$0xff]  ;;  %v312_v51 = vmul.f32 %v175_v45, %v175_v45 }
  0x78   : > { %v225_v62 = vadd.f32 %v224_v58, %v161_v53  ;;  %v360_v0 = vadd.f32 %v359_v60, %v297_v55  ;;  %v177_v53 = vld [vmem:[%s774_s19 + $0x178] sm:$0xff]  ;;  %v313_v55 = vmul.f32 %v176_v49, %v176_v49 }
  0x7a   : > { %v226_v2 = vadd.f32 %v225_v62, %v162_v57  ;;  %v361_v4 = vadd.f32 %v360_v0, %v298_v59  ;;  %v178_v57 = vld [vmem:[%s774_s19 + $0x180] sm:$0xff]  ;;  %v314_v59 = vmul.f32 %v177_v53, %v177_v53 }
  0x7c   : > { %v227_v6 = vadd.f32 %v226_v2, %v163_v61  ;;  %v362_v8 = vadd.f32 %v361_v4, %v299_v63  ;;  %v179_v61 = vld [vmem:[%s774_s19 + $0x188] sm:$0xff]  ;;  %v315_v63 = vmul.f32 %v178_v57, %v178_v57 }
  0x7e   : > { %v228_v10 = vadd.f32 %v227_v6, %v164_v1  ;;  %v363_v12 = vadd.f32 %v362_v8, %v300_v3  ;;  %v180_v1 = vld [vmem:[%s774_s19 + $0x190] sm:$0xff]  ;;  %v316_v3 = vmul.f32 %v179_v61, %v179_v61 }
  0x80   : > { %v229_v14 = vadd.f32 %v228_v10, %v165_v5  ;;  %v364_v16 = vadd.f32 %v363_v12, %v301_v7  ;;  %v181_v5 = vld [vmem:[%s774_s19 + $0x198] sm:$0xff]  ;;  %v317_v7 = vmul.f32 %v180_v1, %v180_v1 }
  0x82   : > { %v230_v18 = vadd.f32 %v229_v14, %v166_v9  ;;  %v365_v20 = vadd.f32 %v364_v16, %v302_v11  ;;  %v182_v9 = vld [vmem:[%s774_s19 + $0x1a0] sm:$0xff]  ;;  %v318_v11 = vmul.f32 %v181_v5, %v181_v5 }
  0x84   : > { %v231_v22 = vadd.f32 %v230_v18, %v167_v13  ;;  %v366_v24 = vadd.f32 %v365_v20, %v303_v15  ;;  %v183_v13 = vld [vmem:[%s774_s19 + $0x1a8] sm:$0xff]  ;;  %v319_v15 = vmul.f32 %v182_v9, %v182_v9 }
  0x86   : > { %v232_v26 = vadd.f32 %v231_v22, %v168_v17  ;;  %v367_v28 = vadd.f32 %v366_v24, %v304_v19  ;;  %v184_v17 = vld [vmem:[%s774_s19 + $0x1b0] sm:$0xff]  ;;  %v320_v19 = vmul.f32 %v183_v13, %v183_v13 }
  0x88   : > { %v233_v30 = vadd.f32 %v232_v26, %v169_v21  ;;  %v368_v32 = vadd.f32 %v367_v28, %v305_v23  ;;  %v185_v21 = vld [vmem:[%s774_s19 + $0x1b8] sm:$0xff]  ;;  %v321_v23 = vmul.f32 %v184_v17, %v184_v17 }
  0x8a   : > { %v234_v34 = vadd.f32 %v233_v30, %v170_v25  ;;  %v369_v36 = vadd.f32 %v368_v32, %v306_v27  ;;  %v186_v25 = vld [vmem:[%s774_s19 + $0x1c0] sm:$0xff]  ;;  %v322_v27 = vmul.f32 %v185_v21, %v185_v21 }
  0x8c   : > { %v235_v38 = vadd.f32 %v234_v34, %v171_v29  ;;  %v370_v40 = vadd.f32 %v369_v36, %v307_v31  ;;  %v187_v29 = vld [vmem:[%s774_s19 + $0x1c8] sm:$0xff]  ;;  %v323_v31 = vmul.f32 %v186_v25, %v186_v25 }
  0x8e   : > { %v236_v42 = vadd.f32 %v235_v38, %v172_v33  ;;  %v371_v44 = vadd.f32 %v370_v40, %v308_v35  ;;  %v188_v33 = vld [vmem:[%s774_s19 + $0x1d0] sm:$0xff]  ;;  %v324_v35 = vmul.f32 %v187_v29, %v187_v29 }
  0x90   : > { %v237_v46 = vadd.f32 %v236_v42, %v173_v37  ;;  %v372_v48 = vadd.f32 %v371_v44, %v309_v39  ;;  %v189_v37 = vld [vmem:[%s774_s19 + $0x1d8] sm:$0xff]  ;;  %v325_v39 = vmul.f32 %v188_v33, %v188_v33 }
  0x92   : > { %v238_v50 = vadd.f32 %v237_v46, %v174_v41  ;;  %v373_v52 = vadd.f32 %v372_v48, %v310_v43  ;;  %v190_v41 = vld [vmem:[%s774_s19 + $0x1e0] sm:$0xff]  ;;  %v326_v43 = vmul.f32 %v189_v37, %v189_v37 }
  0x94   : > { %v239_v54 = vadd.f32 %v238_v50, %v175_v45  ;;  %v374_v56 = vadd.f32 %v373_v52, %v311_v47  ;;  %v191_v45 = vld [vmem:[%s774_s19 + $0x1e8] sm:$0xff]  ;;  %v327_v47 = vmul.f32 %v190_v41, %v190_v41 }
  0x96   : > { %v240_v58 = vadd.f32 %v239_v54, %v176_v49  ;;  %v375_v60 = vadd.f32 %v374_v56, %v312_v51  ;;  %v192_v49 = vld [vmem:[%s774_s19 + $0x1f0] sm:$0xff]  ;;  %v328_v51 = vmul.f32 %v191_v45, %v191_v45 }
  0x98   : > { %v241_v62 = vadd.f32 %v240_v58, %v177_v53  ;;  %v376_v0 = vadd.f32 %v375_v60, %v313_v55  ;;  %v193_v53 = vld [vmem:[%s774_s19 + $0x1f8] sm:$0xff]  ;;  %v329_v55 = vmul.f32 %v192_v49, %v192_v49 }
  0x99   : > { %v330_v58 = vmul.f32 %v193_v53, %v193_v53 }
  0x9a   : > { %v242_v2 = vadd.f32 %v241_v62, %v178_v57  ;;  %v377_v4 = vadd.f32 %v376_v0, %v314_v59 }
  0x9c   : > { %v243_v6 = vadd.f32 %v242_v2, %v179_v61  ;;  %v378_v8 = vadd.f32 %v377_v4, %v315_v63 }
  0x9e   : > { %v244_v10 = vadd.f32 %v243_v6, %v180_v1  ;;  %v379_v12 = vadd.f32 %v378_v8, %v316_v3 }
  0xa0   : > { %v245_v14 = vadd.f32 %v244_v10, %v181_v5  ;;  %v380_v16 = vadd.f32 %v379_v12, %v317_v7  ;;  %v194_v7 = vld [vmem:[#allocation2] sm:$0x1]  ;;  %v266_v12 = vld [vmem:[#allocation3] sm:$0x1] }
  0xa2   : > { %v246_v18 = vadd.f32 %v245_v14, %v182_v9  ;;  %v381_v20 = vadd.f32 %v380_v16, %v318_v11 }
  0xa4   : > { %v247_v22 = vadd.f32 %v246_v18, %v183_v13  ;;  %v382_v24 = vadd.f32 %v381_v20, %v319_v15 }
  0xa6   : > { %v248_v26 = vadd.f32 %v247_v22, %v184_v17  ;;  %v383_v28 = vadd.f32 %v382_v24, %v320_v19 }
  0xa8   : > { %v249_v30 = vadd.f32 %v248_v26, %v185_v21  ;;  %v384_v32 = vadd.f32 %v383_v28, %v321_v23 }
  0xaa   : > { %v250_v34 = vadd.f32 %v249_v30, %v186_v25  ;;  %v385_v36 = vadd.f32 %v384_v32, %v322_v27 }
  0xac   : > { %v251_v38 = vadd.f32 %v250_v34, %v187_v29  ;;  %v386_v40 = vadd.f32 %v385_v36, %v323_v31 }
  0xae   : > { %v252_v42 = vadd.f32 %v251_v38, %v188_v33  ;;  %v387_v44 = vadd.f32 %v386_v40, %v324_v35 }
  0xb0   : > { %v253_v46 = vadd.f32 %v252_v42, %v189_v37  ;;  %v388_v48 = vadd.f32 %v387_v44, %v325_v39 }
  0xb2   : > { %v254_v50 = vadd.f32 %v253_v46, %v190_v41  ;;  %v389_v52 = vadd.f32 %v388_v48, %v326_v43 }
  0xb4   : > { %v255_v54 = vadd.f32 %v254_v50, %v191_v45  ;;  %v390_v56 = vadd.f32 %v389_v52, %v327_v47 }
  0xb6   : > { %v256_v57 = vadd.f32 %v255_v54, %v192_v49  ;;  %v391_v59 = vadd.f32 %v390_v56, %v328_v51 }
  0xb8   : > { %v257_v60 = vadd.f32 %v256_v57, %v193_v53  ;;  %v392_v61 = vadd.f32 %v391_v59, %v329_v55 }
  0xba   : > { %v258_v62 = vrot.slane %v257_v60, 4  ;;  %v393_v63 = vadd.f32 %v392_v61, %v330_v58 }
  0xbc   : > { %v259_v0 = vadd.f32 %v258_v62, %v257_v60  ;;  %v394_v1 = vrot.slane %v393_v63, 4 }
  0xbe   : > { %v260_v2 = vrot.slane %v259_v0, 2  ;;  %v395_v3 = vadd.f32 %v394_v1, %v393_v63 }
  0xc0   : > { %v261_v4 = vadd.f32 %v260_v2, %v259_v0  ;;  %v396_v5 = vrot.slane %v395_v3, 2 }
  0xc2   : > { %v262_v6 = vrot.slane %v261_v4, 1  ;;  %v397_v8 = vadd.f32 %v396_v5, %v395_v3 }
  0xc4   : > { %v263_v9 = vadd.f32 %v262_v6, %v261_v4  ;;  %v398_v10 = vrot.slane %v397_v8, 1  ;;  %405 = sbr.rel (%p514_p7) target bundleno = 453 (0x1c5), region = 36 }
  0xc6   : > { %v264_v11 = vadd.f32 %v263_v9, %v194_v7  ;;  %v399_v13 = vadd.f32 %v398_v10, %v397_v8 }
  0xc8   : > { %265 = vst [vmem:[#allocation2] sm:$0x1] %v264_v11  ;;  %v400_v14 = vadd.f32 %v399_v13, %v266_v12 }
  0xca   : > { %401 = vst [vmem:[#allocation3] sm:$0x1] %v400_v14 }
  0xcf   : > { %v406_v15 = vld [vmem:[#allocation2] sm:$0x1] }
  0xd0   : > { %v408_v17 = vsel %vm407_vm0, %v406_v15, 0.0 }
  0xd1   : > { %v420_v16 = vld [vmem:[#allocation3] sm:$0x1]  ;;  %409 = vadd.xlane.f32.xlu0 %v408_v17 }
  0xd2   : > { %v421_v18 = vsel %vm407_vm0, %v420_v16, 0.0 }
  0xd5   : > { %422 = vadd.xlane.f32.xlu0 %v421_v18 }
 0x15e   : > { %v410_v19 = vpop.xlane.xlu0 %409 }
 0x15f   : > { %v411_v20 = vrot.slane %v410_v19, 4 }
 0x161   : > { %v412_v21 = vadd.f32 %v411_v20, %v410_v19 }
 0x162   : > { %v423_v22 = vpop.xlane.xlu0 %422 }
 0x163   : > { %v413_v23 = vrot.slane %v412_v21, 2  ;;  %v424_v24 = vrot.slane %v423_v22, 4 }
 0x165   : > { %v425_v25 = vadd.f32 %v424_v24, %v423_v22  ;;  %v414_v26 = vadd.f32 %v413_v23, %v412_v21 }
 0x167   : > { %v426_v27 = vrot.slane %v425_v25, 2  ;;  %v415_v28 = vrot.slane %v414_v26, 1 }
 0x169   : > { %v427_v29 = vadd.f32 %v426_v27, %v425_v25  ;;  %v416_v30 = vadd.f32 %v415_v28, %v414_v26 }
 0x16b   : > { %520 = vpush %v416_v30  ;;  %v428_v31 = vrot.slane %v427_v29, 1 }
 0x16d   : > { %v429_v32 = vadd.f32 %v428_v31, %v427_v29 }
 0x16f   : > { %522 = vpush %v429_v32 }
 0x19c   : > { %s521_s9 = spop %520 }
 0x19d   : > { %s418_s15 = smul.f32 1.4204546e-05, %s521_s9 }
 0x19f   : > { %v419_v33 = vstv %s418_s15 }
 0x1a0   : > { %446 = vst [vmem:[#allocation7] sm:$0x1] %v419_v33  ;;  %s523_s20 = spop %522  ;;  %v433_v34 = vmul.f32 %v419_v33, %v419_v33 }
 0x1a1   : > { %s431_s21 = smul.f32 1.4204546e-05, %s523_s20 }
 0x1a3   : > { %v432_v35 = vstv %s431_s21 }
 0x1a4   : > { %v434_v36 = vsub.f32 %v432_v35, %v433_v34 }
 0x1a6   : > { %v435_v37 = vmax.f32 %v434_v36, 0.0 }
 0x1a8   : > { %573 = vrsqrt.f32 %v435_v37  ;;  %vm438_vm1 = vcmp.eq.f32.partialorder %v435_v37, inf  ;;  %v441_v40 = vand.u32 2147483648, %v435_v37  ;;  %vm440_vm2 = vcmp.eq.f32.partialorder %v435_v37, 0.0 }
 0x1b2   : > { %v574_v38 = vpop.eup %573 }
 0x1b3   : > { %v437_v39 = vmul.f32 %v574_v38, %v435_v37 }
 0x1b5   : > { %v439_v41 = vsel %vm438_vm1, %v435_v37, %v437_v39 }
 0x1b6   : > { %v442_v42 = vsel %vm440_vm2, %v441_v40, %v439_v41 }
 0x1b7   : > { %v443_v43 = vadd.f32 1e-09, %v442_v42 }
 0x1b9   : > { %575 = vrcp.f32 %v443_v43 }
 0x1c3   : > { %v576_v44 = vpop.eup %575 }
 0x1c4   : > { %447 = vst [vmem:[#allocation7 + $0x1] sm:$0x1] %v576_v44 }
 0x1c5 PF: > { %p535_p8 = scmp.eq.s32.totalorder %s707_s10, 2  ;;  %s677_s22 = smov [#allocation7]  }
 0x1c6   : > { %s455_s23 = sshll.u32 %s677_s22, 4  ;;  %s456_s23 = int_to_ptr.vmem [resolvable:$true] %s455_s23 }
 0x1c7   : > { %s607_s24 = scalar_lea.vmem %s456_s23, 32  ;;  %p614_p10 = scmp.lt.s32.totalorder %s456_s23, %s456_s23 }
 0x1c8   : > { %p608_p4 = scmp.ne.s32.totalorder %s456_s23, %s607_s24  ;;  %p615_p12 = scmp.lt.s32.totalorder %s607_s24, %s607_s24 }
 0x1ca   : > { %p609_p5 = pnand %p608_p4, %p535_p8  ;;  %p616_p0 = por %p615_p12, %p614_p10 }
 0x1cc   : > { %p610_p6 = pneg %p609_p5 }
 0x1ce   : > { %p617_p1 = pnand %p616_p0, %p610_p6 }
 0x1d0   : > { %620 = shalt.err (!%p617_p1)
}
 0x1d1   : > { %s621_s27 = scalar_lea.hbm %s883_s1, 32 }
 0x1d2   : > { %p622_p2 = scmp.ne.s32.totalorder %s883_s1, %s621_s27  ;;  %p627_p3 = scmp.lt.u32.totalorder %s621_s27, %s883_s1 }
 0x1d4   : > { %p623_p11 = pnand %p622_p2, %p535_p8 }
 0x1d6   : > { %p624_p13 = pneg %p623_p11 }
 0x1d8   : > { %p629_p9 = pnand %p627_p3, %p624_p13 }
 0x1da   : > { %632 = shalt.err (!%p629_p9)
}
 0x1db   : > { %527 = dma.vmem_to_hbm [thread:$0]  (%p535_p8), %s456_s23, 32, %s883_s1, [#allocation6]  }
 0x1dc   : > { %654 = dma.done.wait (%p535_p8), [#allocation6], 32  }
 0x1dd   : > { %656 = vsyncadd (%p535_p8), [#allocation6], 4294967264 }
 0x1de PF: > { %p12_p7 = scmp.ge.s32.totalorder %s710_s11, 5   ;;  %s887_s6 = smov %s663_s7 }
 0x1df   : > { %s888_s7 = smov %s667_s8  ;;  %s889_s8 = smov %s720_s14 }
 0x1e0   : > { %s890_s9 = smov %s710_s11  ;;  %14 = sbr.rel (!%p12_p7) target bundleno = 4 (0x4), region = 69 }
 0x1e7   :  { %468 = vsyncpa [#allocation5], 1 }
 0x1e8   :  { %470 = vsyncpa [#allocation5 + $0x1], 1 }
 0x1e9   :  { %471 = vsyncpa [#allocation6], 1 }
 0x1ea   :  { %473 = vsyncpa [#allocation6 + $0x1], 1 }

</bundles_post_ra>
